<compile_context>
chip_gen: v7x
topology: tpu7x:2x2x1
jax: 0.10.0
libtpu: 0.0.40
codegen_flags: <defaults>
</compile_context>

<pallas_src>
import jax
import jax.numpy as jnp
from jax.experimental import pallas as pl
from jax.experimental.pallas import tpu as pltpu

HIDDEN = 512  # nn.GRU(word_dim, 512, ...) — hidden size hard-coded in the module


# --------------------- input projection: gi = x @ W_ih + b_ih ---------------------
def input_proj_kernel(x_ref, w_ref, b_ref, gi_ref):
    # x_ref: (tm, Din) f32   w_ref: (Din, 3H) bf16   b_ref: (1, 3H) f32
    x = x_ref[...].astype(jnp.bfloat16)
    gi_ref[...] = jnp.dot(x, w_ref[...], preferred_element_type=jnp.float32) + b_ref[...]


def input_projection(x_seq, w_ih, b_ih, tm):
    # x_seq: [T, B, Din] f32, w_ih: [2, Din, 3H] bf16, b_ih: [2, 1, 3H] f32
    T, B, Din = x_seq.shape
    G = w_ih.shape[-1]
    M = T * B
    x2 = x_seq.reshape(M, Din)  # contiguous reshape, no copy
    gi = pl.pallas_call(
        input_proj_kernel,
        out_shape=jax.ShapeDtypeStruct((2, M, G), jnp.float32),
        grid=(2, M // tm),
        in_specs=[
            pl.BlockSpec((tm, Din), lambda d, m: (m, 0)),
            pl.BlockSpec((None, Din, G), lambda d, m: (d, 0, 0)),
            pl.BlockSpec((None, 1, G), lambda d, m: (d, 0, 0)),
        ],
        out_specs=pl.BlockSpec((None, tm, G), lambda d, m: (d, m, 0)),
        compiler_params=pltpu.CompilerParams(
            dimension_semantics=("parallel", "parallel")),
    )(x2, w_ih, b_ih)
    return gi.reshape(2, T, B, G)


# ------------------- recurrent GRU (both directions in one call) -------------------
def gru_rec_kernel(len_ref, gi_ref, whh_ref, bhh_ref, out_ref, h_ref):
    d = pl.program_id(0)            # 0 = forward, 1 = backward
    tb = pl.program_id(1)           # time-block index (processing order)
    Tb = pl.num_programs(1)
    TB = gi_ref.shape[0]            # timesteps per block
    H = h_ref.shape[-1]

    @pl.when(tb == 0)
    def _():
        h_ref[...] = jnp.zeros_like(h_ref)

    lengths = len_ref[...]          # (B, 1) int32
    whh = whh_ref[...]              # (H, 3H) bf16
    bhh = bhh_ref[...]              # (1, 3H) f32

    # Original-time block index this grid step operates on (reversed for d==1).
    blk = (1 - d) * tb + d * (Tb - 1 - tb)

    def step(i, h):
        # within-block index in original time coordinates
        j = (1 - d) * i + d * (TB - 1 - i)
        s = blk * TB + j                                   # original timestep
        gi = gi_ref[j]                                     # (B, 3H) f32
        gh = jnp.dot(h.astype(jnp.bfloat16), whh,
                     preferred_element_type=jnp.float32) + bhh
        r = jax.nn.sigmoid(gi[:, :H] + gh[:, :H])
        z = jax.nn.sigmoid(gi[:, H:2 * H] + gh[:, H:2 * H])
        n = jnp.tanh(gi[:, 2 * H:] + r * gh[:, 2 * H:])    # r*(W_hn h + b_hn): PyTorch form
        h_new = (1.0 - z) * n + z * h
        # packed-sequence semantics: carry h unchanged on padded steps
        h_next = jnp.where(s < lengths, h_new, h)
        out_ref[j] = h_next
        return h_next

    h_ref[...] = jax.lax.fori_loop(0, TB, step, h_ref[...], unroll=True)


def gru_bidirectional_layer(gi, len_pad, w_hh, b_hh, TB):
    # gi: [2, T, B, 3H] f32   len_pad: [B, 1] i32
    # w_hh: [2, H, 3H] bf16   b_hh: [2, 1, 3H] f32   ->  [T, B, 2H] f32
    _, T, B, G = gi.shape
    H = w_hh.shape[1]
    Tb = T // TB

    def t_idx(d, tb):
        return (1 - d) * tb + d * (Tb - 1 - tb)

    return pl.pallas_call(
        gru_rec_kernel,
        out_shape=jax.ShapeDtypeStruct((T, B, 2 * H), jnp.float32),
        grid_spec=pltpu.PrefetchScalarGridSpec(
            num_scalar_prefetch=0,
            grid=(2, Tb),
            in_specs=[
                pl.BlockSpec((B, 1), lambda d, tb: (0, 0)),
                pl.BlockSpec((None, TB, B, G), lambda d, tb: (d, t_idx(d, tb), 0, 0)),
                pl.BlockSpec((None, H, G), lambda d, tb: (d, 0, 0)),
                pl.BlockSpec((None, 1, G), lambda d, tb: (d, 0, 0)),
            ],
            # each direction writes its own feature half of the same output
            out_specs=pl.BlockSpec((TB, B, H), lambda d, tb: (t_idx(d, tb), 0, d)),
            scratch_shapes=[pltpu.VMEM((B, H), jnp.float32)],
        ),
        compiler_params=pltpu.CompilerParams(
            # directions are independent (2 TCs on v7x); time carries state
            dimension_semantics=("parallel", "arbitrary")),
    )(len_pad, gi, w_hh, b_hh)


# --------------------------------- fc_layer ---------------------------------
def linear_kernel(x_ref, w_ref, b_ref, o_ref):
    o_ref[...] = (jnp.dot(x_ref[...], w_ref[...], preferred_element_type=jnp.float32)
                  + b_ref[...]).astype(o_ref.dtype)


def linear(x, w, b):
    B, D = x.shape
    O = w.shape[1]
    return pl.pallas_call(
        linear_kernel,
        out_shape=jax.ShapeDtypeStruct((B, O), jnp.float32),
        grid=(1,),
        in_specs=[
            pl.BlockSpec((B, D), lambda i: (0, 0)),
            pl.BlockSpec((D, O), lambda i: (0, 0)),
            pl.BlockSpec((1, O), lambda i: (0, 0)),
        ],
        out_specs=pl.BlockSpec((B, O), lambda i: (0, 0)),
    )(x, w, b)


# ------------------------------- full forward -------------------------------
def _ceil_to(x, m):
    return ((x + m - 1) // m) * m


def txt_encoder_forward(params, x_tokens, lengths, num_layers=2, time_block=8):
    B, T = x_tokens.shape
    H = HIDDEN
    B_pad = _ceil_to(B, 8)                 # sublane-full batch
    T_pad = _ceil_to(T, time_block)        # whole time blocks

    # time-major padded tokens; padded rows/steps are masked out by length
    tok = jnp.zeros((T_pad, B_pad), jnp.int32).at[:T, :B].set(x_tokens.T)
    len_pad = jnp.zeros((B_pad, 1), jnp.int32).at[:B, 0].set(lengths.astype(jnp.int32))

    # TODO(synk): embedding gather stays in plain XLA (data-dependent gather; a
    # Pallas version would need manual DMA gather for no benefit here).
    x = jnp.take(params["embedding"], tok, axis=0)        # [T_pad, B_pad, D] f32

    finals = []   # order: l0_fwd, l0_bwd, l1_fwd, l1_bwd (matches torch.cat over last_hidden)
    layer_in = x
    for l in range(num_layers):
        w_ih, w_hh, b_ih, b_hh = params["gru"][l]
        # full-throughput input projection for all timesteps, both directions
        gi = input_projection(layer_in, w_ih, b_ih, tm=time_block * B_pad)  # [2,T,B,3H]
        layer_out = gru_bidirectional_layer(gi, len_pad, w_hh, b_hh, time_block)  # [T,B,2H]
        finals.append(layer_out[T_pad - 1, :, :H])   # forward final hidden (masked carry)
        finals.append(layer_out[0, :, H:])           # backward final hidden
        layer_in = layer_out

    last_hidden = jnp.concatenate(finals, axis=-1)   # [B_pad, 2*num_layers*H]
    out = linear(last_hidden, params["fc_w"], params["fc_b"])
    return out[:B]


# ----------------------------- deterministic init -----------------------------
def init_params(key, vocab_size, word_dim, output_dim, num_layers):
    keys = iter(jax.random.split(key, 3 + 4 * num_layers))
    params = {"embedding": jax.random.normal(next(keys), (vocab_size, word_dim), jnp.float32) * 0.1}
    gru = []
    for l in range(num_layers):
        din = word_dim if l == 0 else 2 * HIDDEN
        w_ih = (jax.random.normal(next(keys), (2, din, 3 * HIDDEN), jnp.float32) * 0.02
                ).astype(jnp.bfloat16)
        w_hh = (jax.random.normal(next(keys), (2, HIDDEN, 3 * HIDDEN), jnp.float32) * 0.02
                ).astype(jnp.bfloat16)
        b_ih = jax.random.normal(next(keys), (2, 1, 3 * HIDDEN), jnp.float32) * 0.02
        b_hh = jax.random.normal(next(keys), (2, 1, 3 * HIDDEN), jnp.float32) * 0.02
        gru.append((w_ih, w_hh, b_ih, b_hh))
    params["gru"] = gru
    params["fc_w"] = jax.random.normal(next(keys), (2 * num_layers * HIDDEN, output_dim),
                                       jnp.float32) * 0.02
    params["fc_b"] = jax.random.normal(next(keys), (1, output_dim), jnp.float32) * 0.02
    return params


if __name__ == "__main__":
    vocab_size, word_dim, output_dim, num_layers = 50, 64, 128, 2
    B, T = 2, 8

    key = jax.random.PRNGKey(0)
    pkey, tkey = jax.random.split(key)
    params = init_params(pkey, vocab_size, word_dim, output_dim, num_layers)

    x_tokens = jax.random.randint(tkey, (B, T), 0, vocab_size, dtype=jnp.int32)
    lengths = jnp.array([8, 5], dtype=jnp.int32)   # variable lengths (enforce_sorted=False ok)

    out = txt_encoder_forward(params, x_tokens, lengths, num_layers=num_layers)
    out = jax.block_until_ready(out)
    assert out.shape == (B, output_dim) and out.dtype == jnp.float32
    print("KERNEL_OK")
</pallas_src>

<mosaic_0001>
module attributes {stable_mosaic.version = 11 : i64} {
  func.func @input_proj_kernel(%arg0: i32, %arg1: i32, %arg2: memref<64x64xf32, #tpu.memory_space<vmem>>, %arg3: memref<1x64x1536xbf16, #tpu.memory_space<vmem>>, %arg4: memref<1x1x1536xf32, #tpu.memory_space<vmem>>, %arg5: memref<1x64x1536xf32, #tpu.memory_space<vmem>>) attributes {dimension_semantics = [#tpu.dimension_semantics<parallel>, #tpu.dimension_semantics<parallel>], iteration_bounds = array<i64: 2, 1>, scalar_prefetch = 0 : i64, scratch_operands = 0 : i64, tpu.core_type = #tpu.core_type<tc>, window_params = [{transform_indices = @transform_0, window_bounds = array<i64: 64, 64>}, {transform_indices = @transform_1, window_bounds = array<i64: 1, 64, 1536>}, {transform_indices = @transform_2, window_bounds = array<i64: 1, 1, 1536>}, {transform_indices = @transform_3, window_bounds = array<i64: 1, 64, 1536>}]} {
    %c0 = arith.constant 0 : index
    %c0_0 = arith.constant 0 : index
    %0 = vector.load %arg2[%c0, %c0_0] : memref<64x64xf32, #tpu.memory_space<vmem>>, vector<64x64xf32>
    %1 = arith.truncf %0 : vector<64x64xf32> to vector<64x64xbf16>
    %c0_1 = arith.constant 0 : index
    %c0_2 = arith.constant 0 : index
    %c0_3 = arith.constant 0 : index
    %2 = vector.load %arg3[%c0_1, %c0_2, %c0_3] : memref<1x64x1536xbf16, #tpu.memory_space<vmem>>, vector<1x64x1536xbf16>
    %3 = vector.shape_cast %2 : vector<1x64x1536xbf16> to vector<64x1536xbf16>
    %cst = arith.constant dense<0.000000e+00> : vector<64x1536xf32>
    %4 = tpu.matmul %1, %3, %cst {dimension_numbers = #tpu.dot_dimension_numbers<[1], [0], [0], [1], [0, 0, 1, 1], [], []>} : vector<64x64xbf16>, vector<64x1536xbf16>, vector<64x1536xf32> -> vector<64x1536xf32>
    %c0_4 = arith.constant 0 : index
    %c0_5 = arith.constant 0 : index
    %c0_6 = arith.constant 0 : index
    %5 = vector.load %arg4[%c0_4, %c0_5, %c0_6] : memref<1x1x1536xf32, #tpu.memory_space<vmem>>, vector<1x1x1536xf32>
    %6 = vector.shape_cast %5 : vector<1x1x1536xf32> to vector<1x1536xf32>
    %7 = vector.broadcast %6 : vector<1x1536xf32> to vector<64x1536xf32>
    %8 = arith.addf %4, %7 : vector<64x1536xf32>
    %c0_7 = arith.constant 0 : index
    %c0_8 = arith.constant 0 : index
    %c0_9 = arith.constant 0 : index
    %9 = vector.load %arg5[%c0_7, %c0_8, %c0_9] : memref<1x64x1536xf32, #tpu.memory_space<vmem>>, vector<1x64x1536xf32>
    %10 = vector.shape_cast %9 : vector<1x64x1536xf32> to vector<64x1536xf32>
    %11 = vector.shape_cast %8 : vector<64x1536xf32> to vector<1x64x1536xf32>
    tpu.vector_store %arg5[%c0_7, %c0_8, %c0_9], %11 {strides = array<i32>} : memref<1x64x1536xf32, #tpu.memory_space<vmem>>, vector<1x64x1536xf32>,
    return
  }
  func.func @transform_0(%arg0: i32, %arg1: i32) -> (i32, i32) {
    %c0_i32 = arith.constant 0 : i32
    %c0_i32_0 = arith.constant 0 : i32
    return %arg1, %c0_i32 : i32, i32
  }
  func.func @transform_1(%arg0: i32, %arg1: i32) -> (i32, i32, i32) {
    %c0_i32 = arith.constant 0 : i32
    %c0_i32_0 = arith.constant 0 : i32
    %c0_i32_1 = arith.constant 0 : i32
    return %arg0, %c0_i32, %c0_i32_0 : i32, i32, i32
  }
  func.func @transform_2(%arg0: i32, %arg1: i32) -> (i32, i32, i32) {
    %c0_i32 = arith.constant 0 : i32
    %c0_i32_0 = arith.constant 0 : i32
    %c0_i32_1 = arith.constant 0 : i32
    return %arg0, %c0_i32, %c0_i32_0 : i32, i32, i32
  }
  func.func @transform_3(%arg0: i32, %arg1: i32) -> (i32, i32, i32) {
    %c0_i32 = arith.constant 0 : i32
    %c0_i32_0 = arith.constant 0 : i32
    return %arg0, %arg1, %c0_i32 : i32, i32, i32
  }
}

</mosaic_0001>

<bundles_post_ra>
// kernel: tpu_custom_call.1
= control target key start
LH: loop header
LB: loop body
LE: loop exit
PB: predicated region body
PF: predicated region fallthrough
CT: control target
= control target key end

     0   :  { %s2373_s0 = inlined_call_operand.hbm [shape: f32[64,64], index: 0, kind: input, shape index: {}]   ;;  %s2374_s1 = inlined_call_operand.hbm [shape: bf16[2,64,1536], index: 1, kind: input, shape index: {}]   ;;  %s2375_s2 = inlined_call_operand.hbm [shape: f32[2,1,1536], index: 2, kind: input, shape index: {}]   ;;  %s2376_s3 = inlined_call_operand.hbm [shape: f32[2,64,1536], index: 3, kind: output, shape index: {}]  }
   0x1   :  { %2386 = sst [smem:[#allocation15_spill]] %s2374_s1 }
   0x2   :  { %8 = vsyncpa [#allocation3], 0 }
   0x3   :  { %9 = vsyncpa [#allocation6], 0 }
   0x4   :  { %11 = vsyncpa [#allocation6 + $0x1], 0 }
   0x5   :  { %12 = vsyncpa [#allocation4], 0 }
   0x6   :  { %14 = vsyncpa [#allocation4 + $0x1], 0  ;;  %s1766_s12 = smov 0   ;;  %s1768_s13 = smov 0  }
   0x7   :  { %s1770_s14 = smov 0   ;;  %s1772_s15 = smov 0  }
   0x8   :  { %s1774_s16 = smov 0   ;;  %s1776_s17 = smov 0  }
   0x9 LB: > { %2387 = sst [smem:[#allocation12_spill]] %s1729_s16  ;;  %s32_s18 = sadd.s32 1, %s1729_s16  ;;  %s1733_s17 = sphi %s1776_s17, %s20_s17   ;;  %s1729_s16 = sphi %s1774_s16, %s2409_s16   ;;  %s1725_s15 = sphi %s1772_s15, %s2408_s15   ;;  %s1721_s14 = sphi %s1770_s14, %s2412_s14   ;;  %s1717_s13 = sphi %s1768_s13, %s2411_s13   ;;  %s1713_s12 = sphi %s1766_s12, %s2410_s12  }
   0xa   : > { %s65_s19 = sadd.s32 1, %s1721_s14  ;;  %p34_p0 = scmp.ge.s32.totalorder %s32_s18, 2 }
   0xb   : > { %p72_p1 = scmp.ne.s32.totalorder %s1721_s14, %s1717_s13  ;;  %p73_p2 = scmp.eq.s32.totalorder %s1733_s17, 0 }
   0xc   : > { %s2414_s18 = smov (%p34_p0, %s32_s18), 0  ;;  %p1428_p5 = scmp.lt.s32.totalorder %s1733_s17, 2 }
   0xd   : > { %2388 = sst [smem:[#allocation13_spill]] %s2414_s18  ;;  %p74_p4 = por %p73_p2, %p72_p1 }
   0xe   : > { %s62_s20 = ssub.s32 %s1729_s16, %s2414_s18  ;;  %s172_s21 = sand.u32 1, %s1733_s17  }
   0xf   : > { %p63_p6 = scmp.eq.s32.totalorder %s62_s20, 0  ;;  %s174_s22 = sand.u32 1, %s1721_s14  }
  0x10   : > { %s1395_s23 = smul.u32 6144, %s1729_s16  ;;  %s2390_s1 = sld [smem:[#allocation15_spill]] }
  0x11   : > { %s1814_s24 = scalar_select %p63_p6, %s1721_s14, %s65_s19  }
  0x12   : > { %s1394_s25 = smul.u32 384, %s174_s22  ;;  %p1823_p7 = pnand %p1428_p5, %p74_p4 }
  0x13   : > { %2389 = sst [smem:[#allocation14_spill]] %s1814_s24  ;;  %s1829_s5 = scalar_lea.sflag [#allocation6], %s172_s21 }
  0x14   : > { %s2391_s29 = scalar_select %p1823_p7, 1, 0 }
  0x15   : > { %s176_s30 = scalar_lea.vmem [#allocation5], %s1394_s25  ;;  %p2379_p9 = pneg %p1823_p7 }
  0x16   : > { %s1821_s28 = scalar_lea.hbm %s2390_s1, %s1395_s23  ;;  %s183_s4 = sshll.u32 %s176_s30, 4  ;;  %s1827_s4 = int_to_ptr.vmem [resolvable:$true] %s183_s4 }
  0x17   : > { %s1559_s6 = scalar_lea.hbm %s1821_s28, 6144  ;;  %s1564_s9 = scalar_lea.hbm %s2390_s1, 12288 }
  0x18   : > { %p1560_p8 = scmp.ne.s32.totalorder %s1821_s28, %s1559_s6  ;;  %p1565_p12 = scmp.lt.u32.totalorder %s1821_s28, %s2390_s1 }
  0x19   : > { %p1566_p13 = scmp.lt.u32.totalorder %s1564_s9, %s1559_s6  ;;  %p1568_p2 = scmp.lt.u32.totalorder %s1559_s6, %s1821_s28 }
  0x1a   : > { %p1562_p10 = pnand %p2379_p9, %p1560_p8 }
  0x1b   : > { %p1567_p0 = por %p1566_p13, %p1565_p12 }
  0x1c   : > { %p1563_p11 = pneg %p1562_p10 }
  0x1d   : > { %p1569_p4 = por %p1568_p2, %p1567_p0 }
  0x1f   : > { %p1570_p5 = pnand %p1569_p4, %p1563_p11 }
  0x21   : > { %1573 = shalt.err (!%p1570_p5)
}
  0x22   : > { %s1574_s19 = scalar_lea.vmem %s1827_s4, 6144  ;;  %s1735_s20 = smov [#allocation5]  }
  0x23   : > { %p1575_p6 = scmp.ne.s32.totalorder %s1827_s4, %s1574_s19  ;;  %s1579_s21 = sshll.u32 %s1735_s20, 4  ;;  %s1580_s21 = int_to_ptr.vmem [resolvable:$false] %s1579_s21 }
  0x24   : > { %s1581_s23 = scalar_lea.vmem %s1580_s21, 12288  ;;  %p1582_p3 = scmp.lt.s32.totalorder %s1827_s4, %s1580_s21 }
  0x25   : > { %p1577_p8 = pnand %p1575_p6, %p2379_p9  ;;  %p1583_p12 = scmp.lt.s32.totalorder %s1581_s23, %s1574_s19 }
  0x27   : > { %p1578_p10 = pneg %p1577_p8  ;;  %p1584_p13 = por %p1583_p12, %p1582_p3 }
  0x29   : > { %p1585_p0 = pnand %p1584_p13, %p1578_p10 }
  0x2b   : > { %1588 = shalt.err (!%p1585_p0)
}
  0x2c   : > { %s1736_s25 = smov 768   ;;  %s1737_s26 = smov 48  }
  0x2d   : > { %1419 = dma.hbm_to_vmem [thread:$0]  (!%p1823_p7), %s1821_s28, 6144, %s1827_s4, %s1829_s5, %s1736_s25, %s1736_s25, %s1737_s26  }
  0x2e   : > { %s1858_s27 = sadd.s32 4294967295, %s1733_s17   ;;  %s1311_s30 = sadd.s32 4294967294, %s1733_s17  }
  0x2f   : > { %p78_p3 = scmp.ne.s32.totalorder %s1717_s13, %s1713_s12  ;;  %p2378_p11 = scmp.eq.s32.totalorder %s1858_s27, 0 }
  0x30   : > { %p130_p2 = scmp.eq.s32.totalorder %s1858_s27, 1  ;;  %p136_p4 = scmp.eq.s32.totalorder %s1311_s30, 1 }
  0x31   : > { %p1312_p5 = scmp.ge.s32.totalorder %s1733_s17, 1  ;;  %p1868_p6 = por %p2378_p11, %p78_p3 }
  0x32   : > { %p1875_p8 = por %p130_p2, %p72_p1  ;;  %p1879_p10 = por %p136_p4, %p78_p3 }
  0x33   : > { %s2392_s6 = scalar_select %p1868_p6, 1, 0 }
  0x34   : > { %s2393_s28 = scalar_select %p1875_p8, 1, 0 }
  0x35   : > { %s2394_s4 = scalar_select %p1879_p10, 1, 0 }
  0x36   : > { %p143_p12 = scmp.lt.s32.totalorder %s1733_s17, 3  ;;  %s1738_s8 = smov [#allocation2]  }
  0x37   : > { %s158_s9 = sshll.u32 %s1738_s8, 4  ;;  %s1396_s10 = smul.u32 12, %s174_s22  ;;  %s159_s9 = int_to_ptr.vmem [resolvable:$true] %s158_s9 }
  0x38   : > { %p1884_p13 = pnand %p1312_p5, %p143_p12  ;;  %s1397_s19 = smul.u32 192, %s1729_s16 }
  0x39   : > { %s1589_s30 = scalar_lea.hbm %s2373_s0, 1024 }
  0x3a   : > { %s2395_s7 = scalar_select %p1884_p13, 1, 0 }
  0x3b   : > { %p1412_p0 = pneg %p1884_p13  ;;  %s1902_s23 = scalar_lea.hbm %s2375_s2, %s1397_s19 }
  0x3c   : > { %p1590_p3 = scmp.ne.s32.totalorder %s2373_s0, %s1589_s30  ;;  %p1596_p12 = scmp.lt.u32.totalorder %s1589_s30, %s2373_s0 }
  0x3d   : > { %p1894_p1 = pnand %p1412_p0, %p2378_p11 }
  0x3f   : > { %p1591_p2 = pneg %p1894_p1 }
  0x41   : > { %p1592_p4 = pnand %p1591_p2, %p1590_p3 }
  0x43   : > { %p1593_p5 = pneg %p1592_p4 }
  0x45   : > { %p1598_p0 = pnand %p1596_p12, %p1593_p5 }
  0x47   : > { %1601 = shalt.err (!%p1598_p0)
}
  0x48   : > { %s1602_s19 = scalar_lea.vmem %s159_s9, 1024  ;;  %p1610_p8 = scmp.lt.s32.totalorder %s159_s9, %s159_s9 }
  0x49   : > { %p1603_p11 = scmp.ne.s32.totalorder %s159_s9, %s1602_s19  ;;  %p1611_p6 = scmp.lt.s32.totalorder %s1602_s19, %s1602_s19 }
  0x4b   : > { %p1605_p9 = pnand %p1603_p11, %p1591_p2  ;;  %p1612_p13 = por %p1611_p6, %p1610_p8 }
  0x4d   : > { %p1606_p10 = pneg %p1605_p9 }
  0x4f   : > { %p1613_p7 = pnand %p1612_p13, %p1606_p10 }
  0x51   : > { %1616 = shalt.err (!%p1613_p7)
}
  0x52   : > { %s1739_s1 = smov 128   ;;  %s1740_s18 = smov 8  }
  0x53   : > { %1415 = dma.hbm_to_vmem [thread:$0]  (!%p1894_p1), %s2373_s0, 1024, %s159_s9, [#allocation3], %s1739_s1, %s1739_s1, %s1740_s18  }
  0x54   : > { %s197_s25 = scalar_lea.vmem [#allocation7], %s1396_s10  ;;  %s1617_s30 = scalar_lea.hbm %s1902_s23, 192 }
  0x55   : > { %s205_s26 = sshll.u32 %s197_s25, 4  ;;  %p1618_p9 = scmp.ne.s32.totalorder %s1902_s23, %s1617_s30  ;;  %s206_s26 = int_to_ptr.vmem [resolvable:$true] %s205_s26 }
  0x56   : > { %p2397_p11 = scmp.ne.s32.totalorder %s2391_s29, 0  ;;  %s1622_s19 = scalar_lea.hbm %s2375_s2, 384 }
  0x57   : > { %p1623_p10 = scmp.lt.u32.totalorder %s1902_s23, %s2375_s2  ;;  %p1624_p13 = scmp.lt.u32.totalorder %s1622_s19, %s1617_s30 }
  0x58   : > { %p2398_p7 = pneg %p2397_p11  ;;  %p1626_p1 = scmp.lt.u32.totalorder %s1617_s30, %s1902_s23 }
  0x59   : > { %p1625_p3 = por %p1624_p13, %p1623_p10 }
  0x5a   : > { %p1620_p6 = pnand %p1618_p9, %p2398_p7 }
  0x5b   : > { %p1627_p2 = por %p1626_p1, %p1625_p3 }
  0x5c   : > { %p1621_p8 = pneg %p1620_p6 }
  0x5e   : > { %p1628_p4 = pnand %p1627_p2, %p1621_p8 }
  0x60   : > { %1631 = shalt.err (!%p1628_p4)
}
  0x61   : > { %s1632_s9 = scalar_lea.vmem %s206_s26, 192  ;;  %p2399_p12 = pmov %p2398_p7 }
  0x62   : > { %p1633_p5 = scmp.ne.s32.totalorder %s206_s26, %s1632_s9  ;;  %s1741_s10 = smov [#allocation7]  }
  0x63   : > { %s1637_s11 = sshll.u32 %s1741_s10, 4  ;;  %s1638_s11 = int_to_ptr.vmem [resolvable:$false] %s1637_s11 }
  0x64   : > { %p1635_p0 = pnand %p1633_p5, %p2399_p12  ;;  %s1639_s1 = scalar_lea.vmem %s1638_s11, 384 }
  0x65   : > { %p1640_p7 = scmp.lt.s32.totalorder %s206_s26, %s1638_s11  ;;  %p1641_p6 = scmp.lt.s32.totalorder %s1639_s1, %s1632_s9 }
  0x66   : > { %p1636_p9 = pneg %p1635_p0 }
  0x67   : > { %p1642_p10 = por %p1641_p6, %p1640_p7 }
  0x69   : > { %p1643_p13 = pnand %p1642_p10, %p1636_p9 }
  0x6b   : > { %1646 = shalt.err (!%p1643_p13)
}
  0x6c   : > { %1422 = dma.hbm_to_vmem [thread:$0]  (!%p2397_p11), %s1902_s23, 192, %s206_s26, %s1829_s5  }
  0x6d   : > { %p2400_p8 = scmp.ne.s32.totalorder %s2395_s7, 0 }
  0x6e   : > { %p2401_p3 = scmp.eq.s32.totalorder (!%p2400_p8), %s1858_s27, 0 }
  0x6f   : > { %214 = sbr.rel (%p2400_p8) target bundleno = 462 (0x1ce), region = 32 }
  0x76   : > { %1700 = dma.done.wait (%p2401_p3), [#allocation3], 1024   ;;  %p2402_p1 = pmov %p2401_p3 }
  0x77   : > { %s220_s16 = sand.u32 1, %s1858_s27   ;;  %s1948_s24 = sand.u32 1, %s1717_s13  }
  0x78   : > { %1702 = vsyncadd (%p2402_p1), [#allocation3], 4294966272  ;;  %s1398_s29 = smul.u32 384, %s1948_s24  ;;  %s221_s18 = scalar_lea.sflag [#allocation6], %s220_s16 }
  0x79   : > { %p2403_p11 = scmp.ne.s32.totalorder %s2392_s6, 0 }
  0x7a   : > { %s1951_s20 = scalar_lea.vmem [#allocation5], %s1398_s29 }
  0x7b   : > { %1704 = dma.done.wait (%p2403_p11), %s221_s18, 6336  }
  0x7c   : > { %1706 = vsyncadd (%p2403_p11), %s221_s18, 4294960960  ;;  %v1742_v0 = vmov 0   ;;  %v1487_v1 = vld [vmem:[%s1951_s20 + $0x4] ss:$48 sps:$4 sm:$0xff]   ;;  %v1489_v2 = vld [vmem:[%s1951_s20 + $0xc] ss:$48 sps:$4 sm:$0xff]   ;;  %v328_v61 = vlaneseq }
  0x7d   : > { %673 = vmatprep.mubr.bf16.mxu0 %v1742_v0  ;;  %746 = vmatprep.mubr.bf16.mxu1 %v1742_v0  ;;  %v1491_v3 = vld [vmem:[%s1951_s20] ss:$48 sps:$4 sm:$0xff]   ;;  %v1492_v4 = vld [vmem:[%s1951_s20 + $0x8] ss:$48 sps:$4 sm:$0xff]   ;;  %v1493_v5 = vld [vmem:[%s1951_s20 + $0x64] ss:$48 sps:$4 sm:$0xff]  }
  0x7e   : > { %641 = vmatprep.subr.bf16.mxu0 %v1487_v1  ;;  %714 = vmatprep.subr.bf16.mxu1 %v1489_v2  ;;  %v1495_v6 = vld [vmem:[%s1951_s20 + $0x6c] ss:$48 sps:$4 sm:$0xff]   ;;  %v1497_v7 = vld [vmem:[%s1951_s20 + $0x60] ss:$48 sps:$4 sm:$0xff]   ;;  %v1498_v8 = vld [vmem:[%s1951_s20 + $0x68] ss:$48 sps:$4 sm:$0xff]  }
  0x7f   : > { %642 = vmatpush1.bf16.msra.mxu0 %v1491_v3  ;;  %715 = vmatpush1.bf16.msra.mxu1 %v1492_v4  ;;  %v1499_v9 = vld [vmem:[%s1951_s20 + $0xc4] ss:$48 sps:$4 sm:$0xff]   ;;  %v1501_v10 = vld [vmem:[%s1951_s20 + $0xcc] ss:$48 sps:$4 sm:$0xff]   ;;  %v1503_v11 = vld [vmem:[%s1951_s20 + $0xc0] ss:$48 sps:$4 sm:$0xff]  }
  0x80   : > { %643 = vmatprep.subr.bf16.mxu0 %v1493_v5  ;;  %716 = vmatprep.subr.bf16.mxu1 %v1495_v6  ;;  %v1504_v12 = vld [vmem:[%s1951_s20 + $0xc8] ss:$48 sps:$4 sm:$0xff]   ;;  %v1505_v13 = vld [vmem:[%s1951_s20 + $0x124] ss:$48 sps:$4 sm:$0xff]   ;;  %v1507_v14 = vld [vmem:[%s1951_s20 + $0x12c] ss:$48 sps:$4 sm:$0xff]  }
  0x81   : > { %v1509_v15 = vld [vmem:[%s1951_s20 + $0x120] ss:$48 sps:$4 sm:$0xff]   ;;  %v1510_v16 = vld [vmem:[%s1951_s20 + $0x128] ss:$48 sps:$4 sm:$0xff]   ;;  %v1513_v19 = vld [vmem:[%s1951_s20 + $0x14] ss:$48 sps:$4 sm:$0xff]  }
  0x82   : > { %v264_v17 = vld [vmem:[#allocation2] sm:$0xff]  ;;  %v265_v18 = vld [vmem:[#allocation2 + $0x8] sm:$0xff]  ;;  %vm628_vm0 = vcmask 523264   ;;  %v266_v25 = vld [vmem:[#allocation2 + $0x10] sm:$0xff]  ;;  %s1399_s5 = smul.u32 12, %s1948_s24  ;;  %v2078_v62 = vshrl.u32 %v328_v61, 7 }
  0x83   : > { %644 = vmatpush1.bf16.msra.mxu0 %v1497_v7  ;;  %717 = vmatpush1.bf16.msra.mxu1 %v1498_v8  ;;  %v1516_v20 = vld [vmem:[%s1951_s20 + $0x1c] ss:$48 sps:$4 sm:$0xff]   ;;  %v1977_v21 = vpack.c.bf16 %v265_v18, %v264_v17  ;;  %v1511_v22 = vld [vmem:[%s1951_s20 + $0x10] ss:$48 sps:$4 sm:$0xff]   ;;  %v1514_v23 = vld [vmem:[%s1951_s20 + $0x18] ss:$48 sps:$4 sm:$0xff]  }
  0x84   : > { %645 = vmatprep.subr.bf16.mxu0 %v1499_v9  ;;  %718 = vmatprep.subr.bf16.mxu1 %v1501_v10  ;;  %v1519_v24 = vld [vmem:[%s1951_s20 + $0x74] ss:$48 sps:$4 sm:$0xff]   ;;  %v1522_v26 = vld [vmem:[%s1951_s20 + $0x7c] ss:$48 sps:$4 sm:$0xff]   ;;  %v1517_v28 = vld [vmem:[%s1951_s20 + $0x70] ss:$48 sps:$4 sm:$0xff]  }
  0x85   : > { %v267_v27 = vld [vmem:[#allocation2 + $0x18] sm:$0xff]  ;;  %v1525_v30 = vld [vmem:[%s1951_s20 + $0xd4] ss:$48 sps:$4 sm:$0xff]   ;;  %v1523_v33 = vld [vmem:[%s1951_s20 + $0xd0] ss:$48 sps:$4 sm:$0xff]   ;;  %v330_v63 = vsub.s32 0, %v2078_v62 }
  0x86   : > { %v1520_v29 = vld [vmem:[%s1951_s20 + $0x78] ss:$48 sps:$4 sm:$0xff]   ;;  %v1528_v31 = vld [vmem:[%s1951_s20 + $0xdc] ss:$48 sps:$4 sm:$0xff]   ;;  %v1993_v32 = vpack.c.bf16 %v267_v27, %v266_v25  ;;  %v1531_v35 = vld [vmem:[%s1951_s20 + $0x134] ss:$48 sps:$4 sm:$0xff]  }
  0x87   : > { %646 = vmatpush1.bf16.msra.mxu0 %v1503_v11  ;;  %719 = vmatpush1.bf16.msra.mxu1 %v1504_v12  ;;  %v1526_v34 = vld [vmem:[%s1951_s20 + $0xd8] ss:$48 sps:$4 sm:$0xff]   ;;  %v1534_v36 = vld [vmem:[%s1951_s20 + $0x13c] ss:$48 sps:$4 sm:$0xff]   ;;  %v268_v37 = vld [vmem:[#allocation2 + $0x20] sm:$0xff]  ;;  %v338_v1 = vsub.s32 2, %v2078_v62 }
  0x88   : > { %647 = vmatprep.subr.bf16.mxu0 %v1505_v13  ;;  %720 = vmatprep.subr.bf16.mxu1 %v1507_v14  ;;  %v269_v38 = vld [vmem:[#allocation2 + $0x28] sm:$0xff]  ;;  %v1529_v39 = vld [vmem:[%s1951_s20 + $0x130] ss:$48 sps:$4 sm:$0xff]   ;;  %v1537_v41 = vld [vmem:[%s1951_s20 + $0x24] ss:$48 sps:$4 sm:$0xff]   ;;  %v334_v2 = vsub.s32 1, %v2078_v62 }
  0x89   : > { %v1532_v40 = vld [vmem:[%s1951_s20 + $0x138] ss:$48 sps:$4 sm:$0xff]   ;;  %v1540_v42 = vld [vmem:[%s1951_s20 + $0x2c] ss:$48 sps:$4 sm:$0xff]   ;;  %v2009_v43 = vpack.c.bf16 %v269_v38, %v268_v37  ;;  %v270_v44 = vld [vmem:[#allocation2 + $0x30] sm:$0xff]  ;;  %v342_v3 = vsub.s32 3, %v2078_v62 }
  0x8a   : > { %v271_v45 = vld [vmem:[#allocation2 + $0x38] sm:$0xff]  ;;  %v1535_v47 = vld [vmem:[%s1951_s20 + $0x20] ss:$48 sps:$4 sm:$0xff]   ;;  %v1543_v49 = vld [vmem:[%s1951_s20 + $0x84] ss:$48 sps:$4 sm:$0xff]   ;;  %s233_s27 = scalar_lea.vmem [#allocation7], %s1399_s5 }
  0x8b   : > { %648 = vmatpush1.bf16.msra.mxu0 %v1509_v15  ;;  %721 = vmatpush1.bf16.msra.mxu1 %v1510_v16  ;;  %v275_v46 = vpack.c.bf16 %v271_v45, %v270_v44  ;;  %v1538_v48 = vld [vmem:[%s1951_s20 + $0x28] ss:$48 sps:$4 sm:$0xff]   ;;  %v1546_v50 = vld [vmem:[%s1951_s20 + $0x8c] ss:$48 sps:$4 sm:$0xff]   ;;  %v1541_v51 = vld [vmem:[%s1951_s20 + $0x80] ss:$48 sps:$4 sm:$0xff]  }
  0x8c   : > { %787 = vmatprep.subr.bf16.mxu0 %v1513_v19  ;;  %860 = vmatprep.subr.bf16.mxu1 %v1516_v20  ;;  %v1544_v52 = vld [vmem:[%s1951_s20 + $0x88] ss:$48 sps:$4 sm:$0xff]   ;;  %v1549_v53 = vld [vmem:[%s1951_s20 + $0xe4] ss:$48 sps:$4 sm:$0xff]   ;;  %v1552_v54 = vld [vmem:[%s1951_s20 + $0xec] ss:$48 sps:$4 sm:$0xff]  }
  0x8d   : > { %v1547_v55 = vld [vmem:[%s1951_s20 + $0xe0] ss:$48 sps:$4 sm:$0xff]   ;;  %v1550_v56 = vld [vmem:[%s1951_s20 + $0xe8] ss:$48 sps:$4 sm:$0xff]   ;;  %v1555_v57 = vld [vmem:[%s1951_s20 + $0x144] ss:$48 sps:$4 sm:$0xff]  }
  0x8e   : > { %1367 = vmatmul.mubr.msk.bf16.vlgmr.msra.gmra.mrb[0].mxu0 %vm628_vm0, %v1977_v21  ;;  %1371 = vmatmul.mubr.msk.bf16.vlgmr.msra.gmra.mrb[0].mxu1 %vm628_vm0, %v1977_v21  ;;  %v1558_v58 = vld [vmem:[%s1951_s20 + $0x14c] ss:$48 sps:$4 sm:$0xff]   ;;  %v1553_v59 = vld [vmem:[%s1951_s20 + $0x140] ss:$48 sps:$4 sm:$0xff]   ;;  %v1556_v60 = vld [vmem:[%s1951_s20 + $0x148] ss:$48 sps:$4 sm:$0xff]  }
  0x8f   : > { %788 = vmatpush1.bf16.msra.mxu0 %v1511_v22  ;;  %861 = vmatpush1.bf16.msra.mxu1 %v1514_v23  ;;  %v325_v4 = vld [vmem:[%s233_s27 + $0x8] sm:$0xf]  ;;  %v2092_v8 = vld [vmem:[%s233_s27] sm:$0xff]  ;;  %s1400_s6 = smul.u32 768, %s1948_s24  ;;  %s1176_s30 = scalar_lea.sflag [#allocation4], %s1948_s24 }
  0x90   : > { %683 = vmatprep.mubr.bf16.mxu0 %v1742_v0  ;;  %756 = vmatprep.mubr.bf16.mxu1 %v1742_v0  ;;  %v2086_v5 = vrot.slane %v325_v4, %v338_v1  ;;  %v2088_v6 = vrot.slane %v325_v4, %v334_v2  ;;  %v2090_v7 = vrot.slane %v325_v4, %v342_v3  ;;  %s1401_s23 = smul.u32 12288, %s1725_s15  ;;  %p2404_p4 = scmp.ne.s32.totalorder %s2393_s28, 0 }
  0x91   : > { %789 = vmatprep.subr.bf16.mxu0 %v1519_v24  ;;  %862 = vmatprep.subr.bf16.mxu1 %v1522_v26  ;;  %v2096_v9 = vrot.slane %v2092_v8, %v330_v63  ;;  %v2099_v10 = vrot.slane %v2092_v8, %v338_v1  ;;  %v2102_v11 = vrot.slane %v2092_v8, %v334_v2  ;;  %s2111_s7 = scalar_lea.vmem [#allocation8], %s1400_s6  ;;  %s1743_s22 = smov [#allocation8]  }
  0x92   : > { %v2105_v12 = vrot.slane %v2092_v8, %v342_v3  ;;  %s1192_s21 = sshll.u32 %s2111_s7, 4  ;;  %s2314_s26 = scalar_lea.hbm %s2376_s3, %s1401_s23  ;;  %s2316_s21 = int_to_ptr.vmem [resolvable:$true] %s1192_s21 }
  0x93   : > { %790 = vmatpush1.bf16.msra.mxu0 %v1517_v28  ;;  %863 = vmatpush1.bf16.msra.mxu1 %v1520_v29  ;;  %s1647_s8 = scalar_lea.vmem %s2316_s21, 12288  ;;  %s1651_s19 = sshll.u32 %s1743_s22, 4  ;;  %s1652_s19 = int_to_ptr.vmem [resolvable:$false] %s1651_s19 }
  0x94   : > { %791 = vmatprep.subr.bf16.mxu0 %v1525_v30  ;;  %864 = vmatprep.subr.bf16.mxu1 %v1528_v31  ;;  %p1648_p2 = scmp.ne.s32.totalorder %s2316_s21, %s1647_s8  ;;  %s1653_s9 = scalar_lea.vmem %s1652_s19, 24576 }
  0x95   : > { %p1654_p0 = scmp.lt.s32.totalorder %s2316_s21, %s1652_s19  ;;  %p1655_p9 = scmp.lt.s32.totalorder %s1653_s9, %s1647_s8 }
  0x96   : > { %1368 = vmatmul.mubr.msk.bf16.gmra.mrb[4].mxu0 %vm628_vm0, %v1993_v32  ;;  %1372 = vmatmul.mubr.msk.bf16.gmra.mrb[4].mxu1 %vm628_vm0, %v1993_v32  ;;  %p1649_p5 = pnand %p1648_p2, %p2404_p4 }
  0x97   : > { %693 = vmatprep.mubr.bf16.mxu0 %v1742_v0  ;;  %766 = vmatprep.mubr.bf16.mxu1 %v1742_v0  ;;  %p1656_p7 = por %p1655_p9, %p1654_p0 }
  0x98   : > { %792 = vmatpush1.bf16.msra.mxu0 %v1523_v33  ;;  %865 = vmatpush1.bf16.msra.mxu1 %v1526_v34  ;;  %p1650_p12 = pneg %p1649_p5 }
  0x99   : > { %793 = vmatprep.subr.bf16.mxu0 %v1531_v35  ;;  %866 = vmatprep.subr.bf16.mxu1 %v1534_v36 }
  0x9a   : > { %p1657_p6 = pnand %p1656_p7, %p1650_p12 }
  0x9c   : > { %794 = vmatpush1.bf16.msra.mxu0 %v1529_v39  ;;  %867 = vmatpush1.bf16.msra.mxu1 %v1532_v40 }
  0x9d   : > { %933 = vmatprep.subr.bf16.mxu0 %v1537_v41  ;;  %1006 = vmatprep.subr.bf16.mxu1 %v1540_v42 }
  0x9e   : > { %1369 = vmatmul.mubr.msk.bf16.gmra.mrb[8].mxu0 %vm628_vm0, %v2009_v43  ;;  %1373 = vmatmul.mubr.msk.bf16.gmra.mrb[8].mxu1 %vm628_vm0, %v2009_v43 }
  0x9f   : > { %703 = vmatprep.mubr.bf16.mxu0 %v1742_v0  ;;  %776 = vmatprep.mubr.bf16.mxu1 %v1742_v0 }
  0xa6   : > { %1370 = vmatmul.mubr.msk.bf16.gmra.mrb[12].mxu0 %vm628_vm0, %v275_v46  ;;  %1374 = vmatmul.mubr.msk.bf16.gmra.mrb[12].mxu1 %vm628_vm0, %v275_v46 }
  0xa7   : > { %819 = vmatprep.mubr.bf16.mxu0 %v1742_v0  ;;  %892 = vmatprep.mubr.bf16.mxu1 %v1742_v0 }
  0xae   : > { %1375 = vmatmul.mubr.msk.bf16.vlgmr.msra.gmra.mrb[16].mxu0 %vm628_vm0, %v1977_v21  ;;  %1379 = vmatmul.mubr.msk.bf16.vlgmr.msra.gmra.mrb[16].mxu1 %vm628_vm0, %v1977_v21 }
  0xaf   : > { %934 = vmatpush1.bf16.msra.mxu0 %v1535_v47  ;;  %1007 = vmatpush1.bf16.msra.mxu1 %v1538_v48 }
  0xb0   : > { %829 = vmatprep.mubr.bf16.mxu0 %v1742_v0  ;;  %902 = vmatprep.mubr.bf16.mxu1 %v1742_v0 }
  0xb1   : > { %935 = vmatprep.subr.bf16.mxu0 %v1543_v49  ;;  %1008 = vmatprep.subr.bf16.mxu1 %v1546_v50 }
  0xb3   : > { %936 = vmatpush1.bf16.msra.mxu0 %v1541_v51  ;;  %1009 = vmatpush1.bf16.msra.mxu1 %v1544_v52 }
  0xb4   : > { %937 = vmatprep.subr.bf16.mxu0 %v1549_v53  ;;  %1010 = vmatprep.subr.bf16.mxu1 %v1552_v54 }
  0xb6   : > { %1376 = vmatmul.mubr.msk.bf16.gmra.mrb[20].mxu0 %vm628_vm0, %v1993_v32  ;;  %1380 = vmatmul.mubr.msk.bf16.gmra.mrb[20].mxu1 %vm628_vm0, %v1993_v32 }
  0xb7   : > { %839 = vmatprep.mubr.bf16.mxu0 %v1742_v0  ;;  %912 = vmatprep.mubr.bf16.mxu1 %v1742_v0 }
  0xb8   : > { %938 = vmatpush1.bf16.msra.mxu0 %v1547_v55  ;;  %1011 = vmatpush1.bf16.msra.mxu1 %v1550_v56 }
  0xb9   : > { %939 = vmatprep.subr.bf16.mxu0 %v1555_v57  ;;  %1012 = vmatprep.subr.bf16.mxu1 %v1558_v58 }
  0xbc   : > { %940 = vmatpush1.bf16.msra.mxu0 %v1553_v59  ;;  %1013 = vmatpush1.bf16.msra.mxu1 %v1556_v60 }
  0xbe   : > { %1377 = vmatmul.mubr.msk.bf16.gmra.mrb[24].mxu0 %vm628_vm0, %v2009_v43  ;;  %1381 = vmatmul.mubr.msk.bf16.gmra.mrb[24].mxu1 %vm628_vm0, %v2009_v43 }
  0xbf   : > { %849 = vmatprep.mubr.bf16.mxu0 %v1742_v0  ;;  %922 = vmatprep.mubr.bf16.mxu1 %v1742_v0 }
  0xc6   : > { %1378 = vmatmul.mubr.msk.bf16.gmra.mrb[28].mxu0 %vm628_vm0, %v275_v46  ;;  %1382 = vmatmul.mubr.msk.bf16.gmra.mrb[28].mxu1 %vm628_vm0, %v275_v46 }
  0xc7   : > { %965 = vmatprep.mubr.bf16.mxu0 %v1742_v0  ;;  %1038 = vmatprep.mubr.bf16.mxu1 %v1742_v0 }
  0xce   : > { %1383 = vmatmul.mubr.msk.bf16.vlgmr.msra.gmra.mrb[32].mxu0 %vm628_vm0, %v1977_v21  ;;  %1387 = vmatmul.mubr.msk.bf16.vlgmr.msra.gmra.mrb[32].mxu1 %vm628_vm0, %v1977_v21 }
  0xcf   : > { %975 = vmatprep.mubr.bf16.mxu0 %v1742_v0  ;;  %1048 = vmatprep.mubr.bf16.mxu1 %v1742_v0 }
  0xd6   : > { %1384 = vmatmul.mubr.msk.bf16.gmra.mrb[36].mxu0 %vm628_vm0, %v1993_v32  ;;  %1388 = vmatmul.mubr.msk.bf16.gmra.mrb[36].mxu1 %vm628_vm0, %v1993_v32 }
  0xd7   : > { %985 = vmatprep.mubr.bf16.mxu0 %v1742_v0  ;;  %1058 = vmatprep.mubr.bf16.mxu1 %v1742_v0 }
  0xde   : > { %1385 = vmatmul.mubr.msk.bf16.gmra.mrb[40].mxu0 %vm628_vm0, %v2009_v43  ;;  %1389 = vmatmul.mubr.msk.bf16.gmra.mrb[40].mxu1 %vm628_vm0, %v2009_v43 }
  0xdf   : > { %995 = vmatprep.mubr.bf16.mxu0 %v1742_v0  ;;  %1068 = vmatprep.mubr.bf16.mxu1 %v1742_v0  ;;  %v2084_v0 = vrot.slane %v325_v4, %v330_v63 }
  0xe6   : > { %1386 = vmatmul.mubr.msk.bf16.gmra.mrb[44].mxu0 %vm628_vm0, %v275_v46  ;;  %1390 = vmatmul.mubr.msk.bf16.gmra.mrb[44].mxu1 %vm628_vm0, %v275_v46 }
 0x161   : > { %v675_v13 = vpop.f32.mrb[0].mxu0  ;;  %v748_v14 = vpop.f32.mrb[0].mxu1 }
 0x162   : > { %v676_v15 = vadd.f32 %v675_v13, %v2096_v9  ;;  %v749_v16 = vadd.f32 %v748_v14, %v2099_v10  ;;  %v677_v17 = vpop.f32.mrb[1].mxu0  ;;  %v750_v18 = vpop.f32.mrb[1].mxu1  ;;  %v346_v13 = vsub.s32 4, %v2078_v62  ;;  %v354_v14 = vsub.s32 6, %v2078_v62 }
 0x163   : > { %v678_v19 = vadd.f32 %v677_v17, %v2102_v11  ;;  %v751_v20 = vadd.f32 %v750_v18, %v2105_v12  ;;  %v679_v21 = vpop.f32.mrb[2].mxu0  ;;  %v752_v22 = vpop.f32.mrb[2].mxu1 }
 0x164   : > { %1079 = vst [vmem:[%s2111_s7] sm:$0xff] %v676_v15  ;;  %1081 = vst [vmem:[%s2111_s7 + $0x10] sm:$0xff] %v749_v16  ;;  %v680_v23 = vadd.f32 %v679_v21, %v2096_v9  ;;  %v753_v24 = vadd.f32 %v752_v22, %v2099_v10  ;;  %v681_v25 = vpop.f32.mrb[3].mxu0  ;;  %v754_v26 = vpop.f32.mrb[3].mxu1 }
 0x165   : > { %1080 = vst [vmem:[%s2111_s7 + $0x8] sm:$0xff] %v678_v19  ;;  %1082 = vst [vmem:[%s2111_s7 + $0x18] sm:$0xff] %v751_v20  ;;  %v682_v27 = vadd.f32 %v681_v25, %v2102_v11  ;;  %v755_v28 = vadd.f32 %v754_v26, %v2105_v12  ;;  %v350_v19 = vsub.s32 5, %v2078_v62  ;;  %v358_v20 = vsub.s32 7, %v2078_v62 }
 0x166   : > { %1091 = vst [vmem:[%s2111_s7 + $0x60] sm:$0xff] %v680_v23  ;;  %1093 = vst [vmem:[%s2111_s7 + $0x70] sm:$0xff] %v753_v24  ;;  %v2179_v62 = vrot.slane %v2092_v8, %v354_v14 }
 0x167   : > { %1092 = vst [vmem:[%s2111_s7 + $0x68] sm:$0xff] %v682_v27  ;;  %1094 = vst [vmem:[%s2111_s7 + $0x78] sm:$0xff] %v755_v28  ;;  %v2176_v27 = vrot.slane %v2092_v8, %v346_v13 }
 0x169   : > { %v685_v29 = vpop.f32.mrb[4].mxu0  ;;  %v758_v30 = vpop.f32.mrb[4].mxu1 }
 0x16a   : > { %v686_v31 = vadd.f32 %v685_v29, %v2096_v9  ;;  %v759_v32 = vadd.f32 %v758_v30, %v2099_v10  ;;  %v687_v33 = vpop.f32.mrb[5].mxu0  ;;  %v760_v34 = vpop.f32.mrb[5].mxu1 }
 0x16b   : > { %v688_v35 = vadd.f32 %v687_v33, %v2102_v11  ;;  %v761_v36 = vadd.f32 %v760_v34, %v2105_v12  ;;  %v689_v37 = vpop.f32.mrb[6].mxu0  ;;  %v762_v38 = vpop.f32.mrb[6].mxu1 }
 0x16c   : > { %1103 = vst [vmem:[%s2111_s7 + $0xc0] sm:$0xff] %v686_v31  ;;  %1105 = vst [vmem:[%s2111_s7 + $0xd0] sm:$0xff] %v759_v32  ;;  %v690_v39 = vadd.f32 %v689_v37, %v2096_v9  ;;  %v763_v40 = vadd.f32 %v762_v38, %v2099_v10  ;;  %v691_v41 = vpop.f32.mrb[7].mxu0  ;;  %v764_v42 = vpop.f32.mrb[7].mxu1 }
 0x16d   : > { %1104 = vst [vmem:[%s2111_s7 + $0xc8] sm:$0xff] %v688_v35  ;;  %1106 = vst [vmem:[%s2111_s7 + $0xd8] sm:$0xff] %v761_v36  ;;  %v692_v43 = vadd.f32 %v691_v41, %v2102_v11  ;;  %v765_v44 = vadd.f32 %v764_v42, %v2105_v12 }
 0x16e   : > { %1115 = vst [vmem:[%s2111_s7 + $0x120] sm:$0xff] %v690_v39  ;;  %1117 = vst [vmem:[%s2111_s7 + $0x130] sm:$0xff] %v763_v40 }
 0x16f   : > { %1116 = vst [vmem:[%s2111_s7 + $0x128] sm:$0xff] %v692_v43  ;;  %1118 = vst [vmem:[%s2111_s7 + $0x138] sm:$0xff] %v765_v44 }
 0x171   : > { %v695_v45 = vpop.f32.mrb[8].mxu0  ;;  %v768_v46 = vpop.f32.mrb[8].mxu1 }
 0x172   : > { %v696_v47 = vadd.f32 %v695_v45, %v2096_v9  ;;  %v769_v48 = vadd.f32 %v768_v46, %v2099_v10  ;;  %v697_v49 = vpop.f32.mrb[9].mxu0  ;;  %v770_v50 = vpop.f32.mrb[9].mxu1 }
 0x173   : > { %v698_v51 = vadd.f32 %v697_v49, %v2102_v11  ;;  %v771_v52 = vadd.f32 %v770_v50, %v2105_v12  ;;  %v699_v53 = vpop.f32.mrb[10].mxu0  ;;  %v772_v54 = vpop.f32.mrb[10].mxu1 }
 0x174   : > { %1127 = vst [vmem:[%s2111_s7 + $0x180] sm:$0xff] %v696_v47  ;;  %1129 = vst [vmem:[%s2111_s7 + $0x190] sm:$0xff] %v769_v48  ;;  %v700_v55 = vadd.f32 %v699_v53, %v2096_v9  ;;  %v773_v56 = vadd.f32 %v772_v54, %v2099_v10  ;;  %v701_v57 = vpop.f32.mrb[11].mxu0  ;;  %v774_v58 = vpop.f32.mrb[11].mxu1 }
 0x175   : > { %1128 = vst [vmem:[%s2111_s7 + $0x188] sm:$0xff] %v698_v51  ;;  %1130 = vst [vmem:[%s2111_s7 + $0x198] sm:$0xff] %v771_v52  ;;  %v702_v59 = vadd.f32 %v701_v57, %v2102_v11  ;;  %v775_v60 = vadd.f32 %v774_v58, %v2105_v12 }
 0x176   : > { %1139 = vst [vmem:[%s2111_s7 + $0x1e0] sm:$0xff] %v700_v55  ;;  %1141 = vst [vmem:[%s2111_s7 + $0x1f0] sm:$0xff] %v773_v56 }
 0x177   : > { %1140 = vst [vmem:[%s2111_s7 + $0x1e8] sm:$0xff] %v702_v59  ;;  %1142 = vst [vmem:[%s2111_s7 + $0x1f8] sm:$0xff] %v775_v60 }
 0x179   : > { %v705_v61 = vpop.f32.mrb[12].mxu0  ;;  %v778_v63 = vpop.f32.mrb[12].mxu1 }
 0x17a   : > { %v706_v1 = vadd.f32 %v705_v61, %v2096_v9  ;;  %v779_v2 = vadd.f32 %v778_v63, %v2099_v10  ;;  %v707_v3 = vpop.f32.mrb[13].mxu0  ;;  %v780_v4 = vpop.f32.mrb[13].mxu1 }
 0x17b   : > { %v708_v15 = vadd.f32 %v707_v3, %v2102_v11  ;;  %v781_v16 = vadd.f32 %v780_v4, %v2105_v12  ;;  %v709_v17 = vpop.f32.mrb[14].mxu0  ;;  %v782_v18 = vpop.f32.mrb[14].mxu1 }
 0x17c   : > { %1151 = vst [vmem:[%s2111_s7 + $0x240] sm:$0xff] %v706_v1  ;;  %1153 = vst [vmem:[%s2111_s7 + $0x250] sm:$0xff] %v779_v2  ;;  %v710_v21 = vadd.f32 %v709_v17, %v2096_v9  ;;  %v783_v22 = vadd.f32 %v782_v18, %v2099_v10  ;;  %v711_v23 = vpop.f32.mrb[15].mxu0  ;;  %v784_v24 = vpop.f32.mrb[15].mxu1  ;;  %v2184_v9 = vrot.slane %v2092_v8, %v350_v19 }
 0x17d   : > { %1152 = vst [vmem:[%s2111_s7 + $0x248] sm:$0xff] %v708_v15  ;;  %1154 = vst [vmem:[%s2111_s7 + $0x258] sm:$0xff] %v781_v16  ;;  %v712_v25 = vadd.f32 %v711_v23, %v2102_v11  ;;  %v785_v26 = vadd.f32 %v784_v24, %v2105_v12  ;;  %v2187_v10 = vrot.slane %v2092_v8, %v358_v20 }
 0x17e   : > { %1163 = vst [vmem:[%s2111_s7 + $0x2a0] sm:$0xff] %v710_v21  ;;  %1165 = vst [vmem:[%s2111_s7 + $0x2b0] sm:$0xff] %v783_v22 }
 0x17f   : > { %1164 = vst [vmem:[%s2111_s7 + $0x2a8] sm:$0xff] %v712_v25  ;;  %1166 = vst [vmem:[%s2111_s7 + $0x2b8] sm:$0xff] %v785_v26 }
 0x181   : > { %v821_v11 = vpop.f32.mrb[16].mxu0  ;;  %v894_v12 = vpop.f32.mrb[16].mxu1 }
 0x182   : > { %v822_v28 = vadd.f32 %v821_v11, %v2176_v27  ;;  %v895_v29 = vadd.f32 %v894_v12, %v2179_v62  ;;  %v823_v30 = vpop.f32.mrb[17].mxu0  ;;  %v896_v31 = vpop.f32.mrb[17].mxu1 }
 0x183   : > { %v824_v32 = vadd.f32 %v823_v30, %v2184_v9  ;;  %v897_v33 = vadd.f32 %v896_v31, %v2187_v10  ;;  %v825_v8 = vpop.f32.mrb[18].mxu0  ;;  %v898_v34 = vpop.f32.mrb[18].mxu1 }
 0x184   : > { %1083 = vst [vmem:[%s2111_s7 + $0x20] sm:$0xff] %v822_v28  ;;  %1085 = vst [vmem:[%s2111_s7 + $0x30] sm:$0xff] %v895_v29  ;;  %v826_v35 = vadd.f32 %v825_v8, %v2176_v27  ;;  %v899_v36 = vadd.f32 %v898_v34, %v2179_v62  ;;  %v827_v37 = vpop.f32.mrb[19].mxu0  ;;  %v900_v38 = vpop.f32.mrb[19].mxu1 }
 0x185   : > { %1084 = vst [vmem:[%s2111_s7 + $0x28] sm:$0xff] %v824_v32  ;;  %1086 = vst [vmem:[%s2111_s7 + $0x38] sm:$0xff] %v897_v33  ;;  %v828_v39 = vadd.f32 %v827_v37, %v2184_v9  ;;  %v901_v40 = vadd.f32 %v900_v38, %v2187_v10 }
 0x186   : > { %1095 = vst [vmem:[%s2111_s7 + $0x80] sm:$0xff] %v826_v35  ;;  %1097 = vst [vmem:[%s2111_s7 + $0x90] sm:$0xff] %v899_v36 }
 0x187   : > { %1096 = vst [vmem:[%s2111_s7 + $0x88] sm:$0xff] %v828_v39  ;;  %1098 = vst [vmem:[%s2111_s7 + $0x98] sm:$0xff] %v901_v40 }
 0x189   : > { %v831_v41 = vpop.f32.mrb[20].mxu0  ;;  %v904_v42 = vpop.f32.mrb[20].mxu1 }
 0x18a   : > { %v832_v43 = vadd.f32 %v831_v41, %v2176_v27  ;;  %v905_v44 = vadd.f32 %v904_v42, %v2179_v62  ;;  %v833_v45 = vpop.f32.mrb[21].mxu0  ;;  %v906_v46 = vpop.f32.mrb[21].mxu1 }
 0x18b   : > { %v834_v47 = vadd.f32 %v833_v45, %v2184_v9  ;;  %v907_v48 = vadd.f32 %v906_v46, %v2187_v10  ;;  %v835_v49 = vpop.f32.mrb[22].mxu0  ;;  %v908_v50 = vpop.f32.mrb[22].mxu1 }
 0x18c   : > { %1107 = vst [vmem:[%s2111_s7 + $0xe0] sm:$0xff] %v832_v43  ;;  %1109 = vst [vmem:[%s2111_s7 + $0xf0] sm:$0xff] %v905_v44  ;;  %v836_v51 = vadd.f32 %v835_v49, %v2176_v27  ;;  %v909_v52 = vadd.f32 %v908_v50, %v2179_v62  ;;  %v837_v53 = vpop.f32.mrb[23].mxu0  ;;  %v910_v54 = vpop.f32.mrb[23].mxu1 }
 0x18d   : > { %1108 = vst [vmem:[%s2111_s7 + $0xe8] sm:$0xff] %v834_v47  ;;  %1110 = vst [vmem:[%s2111_s7 + $0xf8] sm:$0xff] %v907_v48  ;;  %v838_v55 = vadd.f32 %v837_v53, %v2184_v9  ;;  %v911_v56 = vadd.f32 %v910_v54, %v2187_v10 }
 0x18e   : > { %1119 = vst [vmem:[%s2111_s7 + $0x140] sm:$0xff] %v836_v51  ;;  %1121 = vst [vmem:[%s2111_s7 + $0x150] sm:$0xff] %v909_v52 }
 0x18f   : > { %1120 = vst [vmem:[%s2111_s7 + $0x148] sm:$0xff] %v838_v55  ;;  %1122 = vst [vmem:[%s2111_s7 + $0x158] sm:$0xff] %v911_v56 }
 0x191   : > { %v841_v57 = vpop.f32.mrb[24].mxu0  ;;  %v914_v58 = vpop.f32.mrb[24].mxu1 }
 0x192   : > { %v842_v59 = vadd.f32 %v841_v57, %v2176_v27  ;;  %v915_v60 = vadd.f32 %v914_v58, %v2179_v62  ;;  %v843_v61 = vpop.f32.mrb[25].mxu0  ;;  %v916_v63 = vpop.f32.mrb[25].mxu1 }
 0x193   : > { %v844_v1 = vadd.f32 %v843_v61, %v2184_v9  ;;  %v917_v2 = vadd.f32 %v916_v63, %v2187_v10  ;;  %v845_v3 = vpop.f32.mrb[26].mxu0  ;;  %v918_v4 = vpop.f32.mrb[26].mxu1 }
 0x194   : > { %1131 = vst [vmem:[%s2111_s7 + $0x1a0] sm:$0xff] %v842_v59  ;;  %1133 = vst [vmem:[%s2111_s7 + $0x1b0] sm:$0xff] %v915_v60  ;;  %v846_v13 = vadd.f32 %v845_v3, %v2176_v27  ;;  %v919_v14 = vadd.f32 %v918_v4, %v2179_v62  ;;  %v847_v15 = vpop.f32.mrb[27].mxu0  ;;  %v920_v16 = vpop.f32.mrb[27].mxu1 }
 0x195   : > { %1132 = vst [vmem:[%s2111_s7 + $0x1a8] sm:$0xff] %v844_v1  ;;  %1134 = vst [vmem:[%s2111_s7 + $0x1b8] sm:$0xff] %v917_v2  ;;  %v848_v17 = vadd.f32 %v847_v15, %v2184_v9  ;;  %v921_v18 = vadd.f32 %v920_v16, %v2187_v10 }
 0x196   : > { %1143 = vst [vmem:[%s2111_s7 + $0x200] sm:$0xff] %v846_v13  ;;  %1145 = vst [vmem:[%s2111_s7 + $0x210] sm:$0xff] %v919_v14 }
 0x197   : > { %1144 = vst [vmem:[%s2111_s7 + $0x208] sm:$0xff] %v848_v17  ;;  %1146 = vst [vmem:[%s2111_s7 + $0x218] sm:$0xff] %v921_v18 }
 0x199   : > { %v851_v19 = vpop.f32.mrb[28].mxu0  ;;  %v924_v20 = vpop.f32.mrb[28].mxu1 }
 0x19a   : > { %v852_v21 = vadd.f32 %v851_v19, %v2176_v27  ;;  %v925_v22 = vadd.f32 %v924_v20, %v2179_v62  ;;  %v853_v23 = vpop.f32.mrb[29].mxu0  ;;  %v926_v24 = vpop.f32.mrb[29].mxu1 }
 0x19b   : > { %v854_v25 = vadd.f32 %v853_v23, %v2184_v9  ;;  %v927_v26 = vadd.f32 %v926_v24, %v2187_v10  ;;  %v855_v11 = vpop.f32.mrb[30].mxu0  ;;  %v928_v12 = vpop.f32.mrb[30].mxu1 }
 0x19c   : > { %1155 = vst [vmem:[%s2111_s7 + $0x260] sm:$0xff] %v852_v21  ;;  %1157 = vst [vmem:[%s2111_s7 + $0x270] sm:$0xff] %v925_v22  ;;  %v856_v28 = vadd.f32 %v855_v11, %v2176_v27  ;;  %v929_v29 = vadd.f32 %v928_v12, %v2179_v62  ;;  %v857_v30 = vpop.f32.mrb[31].mxu0  ;;  %v930_v31 = vpop.f32.mrb[31].mxu1 }
 0x19d   : > { %1156 = vst [vmem:[%s2111_s7 + $0x268] sm:$0xff] %v854_v25  ;;  %1158 = vst [vmem:[%s2111_s7 + $0x278] sm:$0xff] %v927_v26  ;;  %v858_v32 = vadd.f32 %v857_v30, %v2184_v9  ;;  %v931_v33 = vadd.f32 %v930_v31, %v2187_v10 }
 0x19e   : > { %1167 = vst [vmem:[%s2111_s7 + $0x2c0] sm:$0xff] %v856_v28  ;;  %1169 = vst [vmem:[%s2111_s7 + $0x2d0] sm:$0xff] %v929_v29 }
 0x19f   : > { %1168 = vst [vmem:[%s2111_s7 + $0x2c8] sm:$0xff] %v858_v32  ;;  %1170 = vst [vmem:[%s2111_s7 + $0x2d8] sm:$0xff] %v931_v33 }
 0x1a1   : > { %v967_v8 = vpop.f32.mrb[32].mxu0  ;;  %v1040_v34 = vpop.f32.mrb[32].mxu1 }
 0x1a2   : > { %v968_v27 = vadd.f32 %v967_v8, %v2084_v0  ;;  %v1041_v62 = vadd.f32 %v1040_v34, %v2086_v5  ;;  %v969_v35 = vpop.f32.mrb[33].mxu0  ;;  %v1042_v36 = vpop.f32.mrb[33].mxu1 }
 0x1a3   : > { %v970_v9 = vadd.f32 %v969_v35, %v2088_v6  ;;  %v1043_v10 = vadd.f32 %v1042_v36, %v2090_v7  ;;  %v971_v37 = vpop.f32.mrb[34].mxu0  ;;  %v1044_v38 = vpop.f32.mrb[34].mxu1 }
 0x1a4   : > { %1087 = vst [vmem:[%s2111_s7 + $0x40] sm:$0xff] %v968_v27  ;;  %1089 = vst [vmem:[%s2111_s7 + $0x50] sm:$0xff] %v1041_v62  ;;  %v972_v39 = vadd.f32 %v971_v37, %v2084_v0  ;;  %v1045_v40 = vadd.f32 %v1044_v38, %v2086_v5  ;;  %v973_v41 = vpop.f32.mrb[35].mxu0  ;;  %v1046_v42 = vpop.f32.mrb[35].mxu1 }
 0x1a5   : > { %1088 = vst [vmem:[%s2111_s7 + $0x48] sm:$0xff] %v970_v9  ;;  %1090 = vst [vmem:[%s2111_s7 + $0x58] sm:$0xff] %v1043_v10  ;;  %v974_v43 = vadd.f32 %v973_v41, %v2088_v6  ;;  %v1047_v44 = vadd.f32 %v1046_v42, %v2090_v7 }
 0x1a6   : > { %1099 = vst [vmem:[%s2111_s7 + $0xa0] sm:$0xff] %v972_v39  ;;  %1101 = vst [vmem:[%s2111_s7 + $0xb0] sm:$0xff] %v1045_v40 }
 0x1a7   : > { %1100 = vst [vmem:[%s2111_s7 + $0xa8] sm:$0xff] %v974_v43  ;;  %1102 = vst [vmem:[%s2111_s7 + $0xb8] sm:$0xff] %v1047_v44 }
 0x1a9   : > { %v977_v45 = vpop.f32.mrb[36].mxu0  ;;  %v1050_v46 = vpop.f32.mrb[36].mxu1 }
 0x1aa   : > { %v978_v47 = vadd.f32 %v977_v45, %v2084_v0  ;;  %v1051_v48 = vadd.f32 %v1050_v46, %v2086_v5  ;;  %v979_v49 = vpop.f32.mrb[37].mxu0  ;;  %v1052_v50 = vpop.f32.mrb[37].mxu1 }
 0x1ab   : > { %v980_v51 = vadd.f32 %v979_v49, %v2088_v6  ;;  %v1053_v52 = vadd.f32 %v1052_v50, %v2090_v7  ;;  %v981_v53 = vpop.f32.mrb[38].mxu0  ;;  %v1054_v54 = vpop.f32.mrb[38].mxu1 }
 0x1ac   : > { %1111 = vst [vmem:[%s2111_s7 + $0x100] sm:$0xff] %v978_v47  ;;  %1113 = vst [vmem:[%s2111_s7 + $0x110] sm:$0xff] %v1051_v48  ;;  %v982_v55 = vadd.f32 %v981_v53, %v2084_v0  ;;  %v1055_v56 = vadd.f32 %v1054_v54, %v2086_v5  ;;  %v983_v57 = vpop.f32.mrb[39].mxu0  ;;  %v1056_v58 = vpop.f32.mrb[39].mxu1 }
 0x1ad   : > { %1112 = vst [vmem:[%s2111_s7 + $0x108] sm:$0xff] %v980_v51  ;;  %1114 = vst [vmem:[%s2111_s7 + $0x118] sm:$0xff] %v1053_v52  ;;  %v984_v59 = vadd.f32 %v983_v57, %v2088_v6  ;;  %v1057_v60 = vadd.f32 %v1056_v58, %v2090_v7 }
 0x1ae   : > { %1123 = vst [vmem:[%s2111_s7 + $0x160] sm:$0xff] %v982_v55  ;;  %1125 = vst [vmem:[%s2111_s7 + $0x170] sm:$0xff] %v1055_v56 }
 0x1af   : > { %1124 = vst [vmem:[%s2111_s7 + $0x168] sm:$0xff] %v984_v59  ;;  %1126 = vst [vmem:[%s2111_s7 + $0x178] sm:$0xff] %v1057_v60 }
 0x1b1   : > { %v987_v61 = vpop.f32.mrb[40].mxu0  ;;  %v1060_v63 = vpop.f32.mrb[40].mxu1 }
 0x1b2   : > { %v988_v1 = vadd.f32 %v987_v61, %v2084_v0  ;;  %v1061_v2 = vadd.f32 %v1060_v63, %v2086_v5  ;;  %v989_v3 = vpop.f32.mrb[41].mxu0  ;;  %v1062_v4 = vpop.f32.mrb[41].mxu1 }
 0x1b3   : > { %v990_v13 = vadd.f32 %v989_v3, %v2088_v6  ;;  %v1063_v14 = vadd.f32 %v1062_v4, %v2090_v7  ;;  %v991_v15 = vpop.f32.mrb[42].mxu0  ;;  %v1064_v16 = vpop.f32.mrb[42].mxu1 }
 0x1b4   : > { %1135 = vst [vmem:[%s2111_s7 + $0x1c0] sm:$0xff] %v988_v1  ;;  %1137 = vst [vmem:[%s2111_s7 + $0x1d0] sm:$0xff] %v1061_v2  ;;  %v992_v17 = vadd.f32 %v991_v15, %v2084_v0  ;;  %v1065_v18 = vadd.f32 %v1064_v16, %v2086_v5  ;;  %v993_v19 = vpop.f32.mrb[43].mxu0  ;;  %v1066_v20 = vpop.f32.mrb[43].mxu1 }
 0x1b5   : > { %1136 = vst [vmem:[%s2111_s7 + $0x1c8] sm:$0xff] %v990_v13  ;;  %1138 = vst [vmem:[%s2111_s7 + $0x1d8] sm:$0xff] %v1063_v14  ;;  %v994_v21 = vadd.f32 %v993_v19, %v2088_v6  ;;  %v1067_v22 = vadd.f32 %v1066_v20, %v2090_v7 }
 0x1b6   : > { %1147 = vst [vmem:[%s2111_s7 + $0x220] sm:$0xff] %v992_v17  ;;  %1149 = vst [vmem:[%s2111_s7 + $0x230] sm:$0xff] %v1065_v18 }
 0x1b7   : > { %1148 = vst [vmem:[%s2111_s7 + $0x228] sm:$0xff] %v994_v21  ;;  %1150 = vst [vmem:[%s2111_s7 + $0x238] sm:$0xff] %v1067_v22 }
 0x1b9   : > { %v997_v23 = vpop.f32.mrb[44].mxu0  ;;  %v1070_v24 = vpop.f32.mrb[44].mxu1 }
 0x1ba   : > { %v998_v25 = vadd.f32 %v997_v23, %v2084_v0  ;;  %v1071_v26 = vadd.f32 %v1070_v24, %v2086_v5  ;;  %v999_v11 = vpop.f32.mrb[45].mxu0  ;;  %v1072_v12 = vpop.f32.mrb[45].mxu1 }
 0x1bb   : > { %v1000_v28 = vadd.f32 %v999_v11, %v2088_v6  ;;  %v1073_v29 = vadd.f32 %v1072_v12, %v2090_v7  ;;  %v1001_v30 = vpop.f32.mrb[46].mxu0  ;;  %v1074_v31 = vpop.f32.mrb[46].mxu1 }
 0x1bc   : > { %1159 = vst [vmem:[%s2111_s7 + $0x280] sm:$0xff] %v998_v25  ;;  %1161 = vst [vmem:[%s2111_s7 + $0x290] sm:$0xff] %v1071_v26  ;;  %v1002_v32 = vadd.f32 %v1001_v30, %v2084_v0  ;;  %v1075_v33 = vadd.f32 %v1074_v31, %v2086_v5  ;;  %v1003_v8 = vpop.f32.mrb[47].mxu0  ;;  %v1076_v34 = vpop.f32.mrb[47].mxu1 }
 0x1bd   : > { %1160 = vst [vmem:[%s2111_s7 + $0x288] sm:$0xff] %v1000_v28  ;;  %1162 = vst [vmem:[%s2111_s7 + $0x298] sm:$0xff] %v1073_v29  ;;  %v1004_v27 = vadd.f32 %v1003_v8, %v2088_v6  ;;  %v1077_v0 = vadd.f32 %v1076_v34, %v2090_v7 }
 0x1be   : > { %1171 = vst [vmem:[%s2111_s7 + $0x2e0] sm:$0xff] %v1002_v32  ;;  %1173 = vst [vmem:[%s2111_s7 + $0x2f0] sm:$0xff] %v1075_v33 }
 0x1bf   : > { %1172 = vst [vmem:[%s2111_s7 + $0x2e8] sm:$0xff] %v1004_v27  ;;  %1174 = vst [vmem:[%s2111_s7 + $0x2f8] sm:$0xff] %v1077_v0 }
 0x1c0   : > { %1660 = shalt.err (!%p1657_p6)
}
 0x1c1   : > { %s1661_s10 = scalar_lea.hbm %s2314_s26, 12288  ;;  %s1665_s16 = scalar_lea.hbm %s2376_s3, 24576 }
 0x1c2   : > { %p1662_p10 = scmp.ne.s32.totalorder %s2314_s26, %s1661_s10  ;;  %p1666_p3 = scmp.lt.u32.totalorder %s2314_s26, %s2376_s3 }
 0x1c3   : > { %p1667_p1 = scmp.lt.u32.totalorder %s1665_s16, %s1661_s10  ;;  %p1669_p2 = scmp.lt.u32.totalorder %s1661_s10, %s2314_s26 }
 0x1c4   : > { %p1663_p13 = pnand %p1662_p10, %p2404_p4 }
 0x1c5   : > { %p1668_p11 = por %p1667_p1, %p1666_p3 }
 0x1c6   : > { %p1664_p8 = pneg %p1663_p13 }
 0x1c7   : > { %p1670_p5 = por %p1669_p2, %p1668_p11 }
 0x1c9   : > { %p1671_p12 = pnand %p1670_p5, %p1664_p8 }
 0x1cb   : > { %1674 = shalt.err (!%p1671_p12)
}
 0x1cc   : > { %s1744_s20 = smov 1536   ;;  %s1745_s5 = smov 96  }
 0x1cd   : > { %1410 = dma.vmem_to_hbm [thread:$0]  (%p2404_p4), %s2316_s21, 12288, %s2314_s26, %s1176_s30, %s1744_s20, %s1744_s20, %s1745_s5  }
 0x1ce PF: > { %s1207_s27 = sand.u32 1, %s1713_s12   ;;  %p2405_p0 = scmp.ne.s32.totalorder %s2394_s4, 0 }
 0x1cf   : > { %p2406_p9 = scmp.ge.s32.totalorder %s1733_s17, 2  ;;  %s1208_s6 = scalar_lea.sflag [#allocation4], %s1207_s27 }
 0x1d1   : > { %p1424_p7 = pnand %p2406_p9, %p2405_p0 }
 0x1d3   : > { %1708 = dma.done.wait (!%p1424_p7), %s1208_s6, 12288  }
 0x1d4   : > { %1710 = vsyncadd (!%p1424_p7), %s1208_s6, 4294955008  ;;  %s20_s17 = sadd.s32 1, %s1733_s17   ;;  %s2407_s7 = sld [smem:[#allocation14_spill]] }
 0x1d5   : > { %p17_p6 = scmp.ge.s32.totalorder %s20_s17, 4   ;;  %s2408_s15 = sld [smem:[#allocation12_spill]] }
 0x1d6   : > { %s2409_s16 = sld [smem:[#allocation13_spill]]  ;;  %s2410_s12 = smov %s1717_s13 }
 0x1d7   : > { %s2411_s13 = smov %s1721_s14  ;;  %19 = sbr.rel (!%p17_p6) target bundleno = 9 (0x9), region = 94 }
 0x1da   : > { %s2412_s14 = smov %s2407_s7 }
 0x1de   :  { %1213 = vsyncpa [#allocation3], 1 }
 0x1df   :  { %1215 = vsyncpa [#allocation3 + $0x1], 1 }
 0x1e0   :  { %1216 = vsyncpa [#allocation6], 1 }
 0x1e1   :  { %1218 = vsyncpa [#allocation6 + $0x1], 1 }
 0x1e2   :  { %1219 = vsyncpa [#allocation4], 1 }
 0x1e3   :  { %1221 = vsyncpa [#allocation4 + $0x1], 1 }

</bundles_post_ra>
